<compile_context>
chip_gen: v6e
topology: v6e:2x2x1
jax: 0.10.0
libtpu: 0.0.40
codegen_flags: <defaults>
</compile_context>

<pallas_src>
import math

import jax
import jax.numpy as jnp
from jax.experimental import pallas as pl
from jax.experimental.pallas import tpu as pltpu


def _lin_reg_kernel(w_ref, b_ref, x_ref, o_ref):
    # w_ref / b_ref: (1,)-shaped scalar-prefetched SMEM refs.
    # x_ref / o_ref: lane-dense VMEM tiles.
    w = w_ref[0]
    b = b_ref[0]
    x = x_ref[...]
    o_ref[...] = w * (x * x) + b


def lin_reg_forward(
    x: jax.Array,
    weights: jax.Array,
    bias: jax.Array,
    *,
    block_rows: int = 1024,   # sublane rows per block (multiple of 8)
    block_cols: int = 512,    # lane columns per block (multiple of 128)
) -> jax.Array:
    """Elementwise y = weights * x**2 + bias via a Pallas TPU kernel.

    Accepts any input shape: the data is flattened, padded to a lane-dense
    (rows, block_cols) slab, processed in ~2 MiB blocks, and reshaped back.
    """
    if weights.shape != (1,) or bias.shape != (1,):
        raise ValueError("weights and bias must have shape (1,)")

    orig_shape = x.shape
    dtype = x.dtype
    n = math.prod(orig_shape) if orig_shape else 1

    # --- Lay the flattened data out as a lane-dense 2-D slab ----------------
    cols = block_cols
    rows = pl.cdiv(n, cols)
    # Use the full first dim as one block when the input is small; otherwise a
    # (block_rows, cols) tile (both dims (8,128)-aligned).
    tm = rows if rows <= block_rows else block_rows
    rows_padded = pl.cdiv(rows, tm) * tm
    padded_n = rows_padded * cols

    flat = jnp.ravel(x)
    if padded_n != n:
        flat = jnp.pad(flat, (0, padded_n - n))
    x2d = flat.reshape(rows_padded, cols)

    grid = (rows_padded // tm,)

    # Advisory cost: 3 flops/elem (2 mul + 1 add), 8 B/elem of HBM traffic.
    cost = pl.CostEstimate(
        flops=3 * padded_n,
        transcendentals=0,
        bytes_accessed=2 * padded_n * x2d.dtype.itemsize,
    )

    out2d = pl.pallas_call(
        _lin_reg_kernel,
        out_shape=jax.ShapeDtypeStruct((rows_padded, cols), dtype),
        grid_spec=pltpu.PrefetchScalarGridSpec(
            # weights / bias land in SMEM once before the grid runs; they are
            # also passed (and ignored) as trailing args to every index_map.
            num_scalar_prefetch=2,
            grid=grid,
            in_specs=[
                pl.BlockSpec((tm, cols), lambda i, w, b: (i, 0)),  # x tile
            ],
            out_specs=pl.BlockSpec((tm, cols), lambda i, w, b: (i, 0)),
        ),
        compiler_params=pltpu.CompilerParams(
            # Shards the grid across both TensorCores on v7x; no-op on v5e/v6e.
            dimension_semantics=("parallel",),
            # Explicit scoped-VMEM limit: safe on every generation and leaves
            # large headroom over the ~8 MiB double-buffered footprint.
            vmem_limit_bytes=32 * 1024 * 1024,
        ),
        cost_estimate=cost,
        # NOTE: input_output_aliases (x -> y) would cut HBM traffic further,
        # but would mutate the caller's x, which the PyTorch module does not
        # do, so it is intentionally not used.
    )(weights, bias, x2d)

    return out2d.reshape(-1)[:n].reshape(orig_shape)


if __name__ == "__main__":
    key = jax.random.PRNGKey(0)
    k_w, k_b, k_x1, k_x2 = jax.random.split(key, 4)

    # Deterministic "parameter init" matching nn.Parameter(torch.randn(1)).
    weights = jax.random.normal(k_w, (1,), dtype=jnp.float32)
    bias = jax.random.normal(k_b, (1,), dtype=jnp.float32)

    # Small vreg-aligned input.
    x1 = jax.random.normal(k_x1, (8, 128), dtype=jnp.float32)
    y1 = jax.block_until_ready(lin_reg_forward(x1, weights, bias))
    ref1 = weights[0] * x1 ** 2 + bias[0]
    assert y1.shape == x1.shape and y1.dtype == x1.dtype
    assert jnp.allclose(y1, ref1, atol=1e-6, rtol=1e-6)

    # Ragged 1-D input (typical linear-regression data shape) to exercise the
    # flatten/pad/unpad path.
    x2 = jax.random.normal(k_x2, (37,), dtype=jnp.float32)
    y2 = jax.block_until_ready(lin_reg_forward(x2, weights, bias))
    ref2 = weights[0] * x2 ** 2 + bias[0]
    assert y2.shape == x2.shape and y2.dtype == x2.dtype
    assert jnp.allclose(y2, ref2, atol=1e-6, rtol=1e-6)

    print("KERNEL_OK")
</pallas_src>

<mosaic_0001>
module attributes {stable_mosaic.version = 11 : i64} {
  func.func @_lin_reg_kernel(%arg0: i32, %arg1: memref<1xf32, #tpu.memory_space<smem>>, %arg2: memref<1xf32, #tpu.memory_space<smem>>, %arg3: memref<2x512xf32, #tpu.memory_space<vmem>>, %arg4: memref<2x512xf32, #tpu.memory_space<vmem>>) attributes {dimension_semantics = [#tpu.dimension_semantics<parallel>], iteration_bounds = array<i64: 1>, scalar_prefetch = 2 : i64, scratch_operands = 0 : i64, tpu.core_type = #tpu.core_type<tc>, window_params = [{transform_indices = @transform_0, window_bounds = array<i64: 2, 512>}, {transform_indices = @transform_1, window_bounds = array<i64: 2, 512>}]} {
    %c0 = arith.constant 0 : index
    %0 = memref.load %arg1[%c0] : memref<1xf32, #tpu.memory_space<smem>>
    %c0_0 = arith.constant 0 : index
    %1 = memref.load %arg2[%c0_0] : memref<1xf32, #tpu.memory_space<smem>>
    %c0_1 = arith.constant 0 : index
    %c0_2 = arith.constant 0 : index
    %2 = vector.load %arg3[%c0_1, %c0_2] : memref<2x512xf32, #tpu.memory_space<vmem>>, vector<2x512xf32>
    %3 = arith.mulf %2, %2 : vector<2x512xf32>
    %4 = vector.broadcast %0 : f32 to vector<2x512xf32>
    %5 = arith.mulf %4, %3 : vector<2x512xf32>
    %6 = vector.broadcast %1 : f32 to vector<2x512xf32>
    %7 = arith.addf %5, %6 : vector<2x512xf32>
    %c0_3 = arith.constant 0 : index
    %c0_4 = arith.constant 0 : index
    %8 = vector.load %arg4[%c0_3, %c0_4] : memref<2x512xf32, #tpu.memory_space<vmem>>, vector<2x512xf32>
    tpu.vector_store %arg4[%c0_3, %c0_4], %7 {strides = array<i32>} : memref<2x512xf32, #tpu.memory_space<vmem>>, vector<2x512xf32>,
    return
  }
  func.func @transform_0(%arg0: i32, %arg1: memref<1xf32, #tpu.memory_space<smem>>, %arg2: memref<1xf32, #tpu.memory_space<smem>>) -> (i32, i32) {
    %c0_i32 = arith.constant 0 : i32
    %c0_i32_0 = arith.constant 0 : i32
    return %arg0, %c0_i32 : i32, i32
  }
  func.func @transform_1(%arg0: i32, %arg1: memref<1xf32, #tpu.memory_space<smem>>, %arg2: memref<1xf32, #tpu.memory_space<smem>>) -> (i32, i32) {
    %c0_i32 = arith.constant 0 : i32
    %c0_i32_0 = arith.constant 0 : i32
    return %arg0, %c0_i32 : i32, i32
  }
}

</mosaic_0001>

<bundles_post_ra>
// kernel: tpu_custom_call.1
= control target key start
LH: loop header
LB: loop body
LE: loop exit
PB: predicated region body
PF: predicated region fallthrough
CT: control target
= control target key end

     0   :  { %10 = vsyncpa [#allocation6], 0  ;;  %s129_s0 = inlined_call_operand.<no memory space> [shape: f32[1], index: 0, kind: input, shape index: {}]   ;;  %s130_s1 = inlined_call_operand.<no memory space> [shape: f32[1], index: 1, kind: input, shape index: {}]   ;;  %s131_s2 = inlined_call_operand.hbm [shape: f32[2,512], index: 2, kind: input, shape index: {}]   ;;  %s132_s3 = inlined_call_operand.hbm [shape: f32[2,512], index: 3, kind: output, shape index: {}]  }
   0x1   :  { %11 = vsyncpa [#allocation7], 0  ;;  %s95_s12 = smov [#allocation5]  }
   0x2   :  { %s18_s13 = sshll.u32 %s95_s12, 4  ;;  %s19_s13 = int_to_ptr.vmem [resolvable:$true] %s18_s13 }
   0x3   :  { %s59_s14 = scalar_lea.vmem %s19_s13, 128  ;;  %p64_p1 = scmp.lt.s32.totalorder %s19_s13, %s19_s13 }
   0x4   :  { %p60_p0 = scmp.ne.s32.totalorder %s19_s13, %s59_s14  ;;  %p65_p2 = scmp.lt.s32.totalorder %s59_s14, %s59_s14 }
   0x6   :  { %p66_p3 = por %p65_p2, %p64_p1 }
   0x8   :  { %p67_p4 = pnand %p66_p3, %p60_p0 }
   0xa   :  { %70 = shalt.err (!%p67_p4)
}
   0xb   :  { %21 = dma.hbm_to_vmem [thread:$0]  %s131_s2, 128, %s19_s13, [#allocation6]  }
   0xc   :  { %91 = dma.done.wait [#allocation6], 128  }
   0xd   :  { %92 = vsyncadd [#allocation6], 4294967168  ;;  %v27_v0 = vld [vmem:[#allocation5] sm:$0xff]  ;;  %v29_v1 = vstv %s129_s0  ;;  %v31_v3 = vstv %s130_s1  ;;  %s96_s21 = smov [#allocation8]  }
   0xe   :  { %v28_v2 = vmul.f32 %v27_v0, %v27_v0  ;;  %s40_s22 = sshll.u32 %s96_s21, 4  ;;  %s41_s22 = int_to_ptr.vmem [resolvable:$true] %s40_s22 }
   0xf   :  { %s71_s23 = scalar_lea.vmem %s41_s22, 128  ;;  %p76_p6 = scmp.lt.s32.totalorder %s41_s22, %s41_s22 }
  0x10   :  { %v30_v4 = vmul.f32 %v29_v1, %v28_v2  ;;  %p72_p5 = scmp.ne.s32.totalorder %s41_s22, %s71_s23  ;;  %p77_p7 = scmp.lt.s32.totalorder %s71_s23, %s71_s23 }
  0x12   :  { %v32_v5 = vadd.f32 %v31_v3, %v30_v4  ;;  %p78_p8 = por %p77_p7, %p76_p6 }
  0x14   :  { %33 = vst [vmem:[#allocation8] sm:$0xff] %v32_v5  ;;  %p79_p9 = pnand %p78_p8, %p72_p5 }
  0x16   :  { %82 = shalt.err (!%p79_p9)
}
  0x17   :  { %43 = dma.vmem_to_hbm [thread:$0]  %s41_s22, 128, %s132_s3, [#allocation7]  }
  0x18   :  { %93 = dma.done.wait [#allocation7], 128  }
  0x19   :  { %94 = vsyncadd [#allocation7], 4294967168 }
  0x1a   :  { %47 = vsyncpa [#allocation6], 1 }
  0x1b   :  { %48 = vsyncpa [#allocation7], 1 }

</bundles_post_ra>
